<compile_context>
chip_gen: v6e
topology: v6e:2x2x1
jax: 0.10.0
libtpu: 0.0.40
codegen_flags: <defaults>
</compile_context>

<pallas_src>
import functools

import jax
import jax.numpy as jnp
from jax.experimental import pallas as pl
from jax.experimental.pallas import tpu as pltpu

_EPS = 1e-5
_FUSED_VMEM_BUDGET = 12 * 1024 * 1024   # conservative vs 32 MiB scoped VMEM
_VMEM_LIMIT = 32 * 1024 * 1024          # safe on v5e / v6e / v7x


def _round_up(x, m):
    return ((x + m - 1) // m) * m


# ---------------------------------------------------------------------------
# Path A: fully fused single kernel (everything VMEM resident).
# ---------------------------------------------------------------------------
def _fused_kernel(x_ref, gamma_ref, beta_ref, w1_ref, w2_ref, b2_ref, o_ref):
    # linear1 (bias dropped: exactly cancelled by the batch-mean subtraction
    # of training-mode BatchNorm).  bf16 MXU operands, f32 accumulation; the
    # casts live in-kernel so x / weights are read from HBM exactly once.
    h = jnp.dot(x_ref[...].astype(jnp.bfloat16),
                w1_ref[...].astype(jnp.bfloat16),
                preferred_element_type=jnp.float32)            # (B, H1) f32

    # Training-mode BatchNorm1d with two-pass (centered) variance.
    mean = jnp.mean(h, axis=0, keepdims=True)                  # (1, H1)
    centered = h - mean
    var = jnp.mean(centered * centered, axis=0, keepdims=True)  # (1, H1)
    scale = gamma_ref[...] * jax.lax.rsqrt(var + _EPS)

    # BN apply + ReLU.
    h = jnp.maximum(centered * scale + beta_ref[...], 0.0)

    # linear2 on the MXU.
    out = jnp.dot(h.astype(jnp.bfloat16), w2_ref[...].astype(jnp.bfloat16),
                  preferred_element_type=jnp.float32)
    o_ref[...] = (out + b2_ref[...]).astype(o_ref.dtype)


# ---------------------------------------------------------------------------
# Path B: large batch -> two gridded kernels (parallel over B tiles).
# ---------------------------------------------------------------------------
def _stats_kernel(x_ref, w1_ref, sum_ref, sq_ref, *, batch, tile_b):
    """Per-tile BN partial statistics only (no (B, H1) HBM intermediate)."""
    # Mask rows past the true batch (ragged last tile) instead of padding x
    # in HBM: zeroed rows contribute exactly nothing to the sums.
    base = pl.program_id(0) * tile_b
    row = jax.lax.broadcasted_iota(jnp.int32, (tile_b, 1), 0)
    x = jnp.where(base + row < batch, x_ref[...], 0.0)

    h = jnp.dot(x.astype(jnp.bfloat16), w1_ref[...].astype(jnp.bfloat16),
                preferred_element_type=jnp.float32)            # (tb, H1) f32
    sum_ref[...] = jnp.sum(h, axis=0, keepdims=True)[None]     # (1, 1, H1)
    sq_ref[...] = jnp.sum(h * h, axis=0, keepdims=True)[None]  # (1, 1, H1)


def _bn_relu_mm2_kernel(x_ref, sums_ref, sqs_ref, gamma_ref, beta_ref,
                        w1_ref, w2_ref, b2_ref, o_ref, *, batch):
    """Per-tile: recompute h = x @ W1, fold stats -> BN, ReLU, linear2."""
    h = jnp.dot(x_ref[...].astype(jnp.bfloat16),
                w1_ref[...].astype(jnp.bfloat16),
                preferred_element_type=jnp.float32)            # (tb, H1) f32

    # Fold partial statistics + BN affine into one (1, H1) scale/shift pair
    # directly in-kernel (no glue XLA dispatches between the two passes).
    # Recomputed per grid step: a tiny (nb, H1) reduction on an idle VPU/XLU,
    # which also keeps ("parallel",) semantics safe (no shared scratch).
    inv_b = 1.0 / batch
    mean = jnp.sum(sums_ref[...], axis=0) * inv_b              # (1, H1)
    ex2 = jnp.sum(sqs_ref[...], axis=0) * inv_b                # (1, H1)
    # TODO(synk): E[h^2] - mean^2 can lose precision when |mean| >> std; a
    # pivoted/Welford accumulation would match PyTorch's variance more closely
    # for pathological activation scales.
    var = jnp.maximum(ex2 - mean * mean, 0.0)
    scale = gamma_ref[...] * jax.lax.rsqrt(var + _EPS)
    shift = beta_ref[...] - mean * scale

    # BN apply + ReLU, then linear2.  (Ragged-tile garbage rows only affect
    # their own output rows, whose out-of-bounds writeback is discarded.)
    h = jnp.maximum(h * scale + shift, 0.0)
    out = jnp.dot(h.astype(jnp.bfloat16), w2_ref[...].astype(jnp.bfloat16),
                  preferred_element_type=jnp.float32)
    o_ref[...] = (out + b2_ref[...]).astype(o_ref.dtype)


# ---------------------------------------------------------------------------
# Wrapper
# ---------------------------------------------------------------------------
@functools.partial(jax.jit, static_argnames=("tile_b", "force_tiled"))
def projection_forward(x, w1, b1, gamma, beta, w2, b2, *, tile_b=512,
                       force_tiled=False):
    """x: (B, in_size) f32.  Returns (B, hidden[1]) f32."""
    B, d_in = x.shape
    h1 = w1.shape[1]
    h2 = w2.shape[1]

    # b1 is accepted for API parity with the PyTorch module but is exactly
    # cancelled by the batch-mean subtraction of training-mode BatchNorm1d.
    del b1

    # --- Path A: fully fused single kernel, gated on a VMEM byte estimate ---
    fused_bytes = (4 * B * (d_in + 2 * h1 + h2)       # x, h (+bf16 copy), out
                   + 4 * (d_in * h1 + h1 * h2)        # W1, W2
                   + 4 * (2 * h1 + h2))               # gamma, beta, b2
    if (not force_tiled) and fused_bytes <= _FUSED_VMEM_BUDGET:
        vmem = pl.BlockSpec(memory_space=pltpu.MemorySpace.VMEM)
        return pl.pallas_call(
            _fused_kernel,
            out_shape=jax.ShapeDtypeStruct((B, h2), jnp.float32),
            in_specs=[vmem] * 6,
            out_specs=vmem,
            compiler_params=pltpu.CompilerParams(vmem_limit_bytes=_VMEM_LIMIT),
        )(x, gamma, beta, w1, w2, b2)

    # --- Path B: tiled two-pass (grid over B rows, "parallel") -------------
    tb = _round_up(max(int(tile_b), 8), 8)
    # Keep at least 2 grid steps so ("parallel",) can shard across both
    # TensorCores on v7x; harmless (single-TC) on v5e/v6e.
    tb = max(8, min(tb, _round_up(pl.cdiv(B, 2), 8)))
    nb = pl.cdiv(B, tb)

    cparams = pltpu.CompilerParams(dimension_semantics=("parallel",),
                                   vmem_limit_bytes=_VMEM_LIMIT)

    # Pass 1: per-tile BN partial statistics (sum, sum-of-squares) only.
    sums, sqs = pl.pallas_call(
        functools.partial(_stats_kernel, batch=B, tile_b=tb),
        grid=(nb,),
        out_shape=(jax.ShapeDtypeStruct((nb, 1, h1), jnp.float32),
                   jax.ShapeDtypeStruct((nb, 1, h1), jnp.float32)),
        in_specs=[pl.BlockSpec((tb, d_in), lambda i: (i, 0)),
                  pl.BlockSpec((d_in, h1), lambda i: (0, 0))],
        out_specs=(pl.BlockSpec((1, 1, h1), lambda i: (i, 0, 0)),
                   pl.BlockSpec((1, 1, h1), lambda i: (i, 0, 0))),
        compiler_params=cparams,
    )(x, w1)

    # Pass 2: recompute h, fold stats -> BN scale/shift in-kernel, ReLU, MM2.
    out = pl.pallas_call(
        functools.partial(_bn_relu_mm2_kernel, batch=B),
        grid=(nb,),
        out_shape=jax.ShapeDtypeStruct((B, h2), jnp.float32),
        in_specs=[pl.BlockSpec((tb, d_in), lambda i: (i, 0)),
                  pl.BlockSpec((nb, 1, h1), lambda i: (0, 0, 0)),
                  pl.BlockSpec((nb, 1, h1), lambda i: (0, 0, 0)),
                  pl.BlockSpec((1, h1), lambda i: (0, 0)),
                  pl.BlockSpec((1, h1), lambda i: (0, 0)),
                  pl.BlockSpec((d_in, h1), lambda i: (0, 0)),
                  pl.BlockSpec((h1, h2), lambda i: (0, 0)),
                  pl.BlockSpec((1, h2), lambda i: (0, 0))],
        out_specs=pl.BlockSpec((tb, h2), lambda i: (i, 0)),
        compiler_params=cparams,
    )(x, sums, sqs, gamma, beta, w1, w2, b2)
    return out


# ---------------------------------------------------------------------------
# Parameters + references
# ---------------------------------------------------------------------------
def init_params(key, in_size, hidden=(256, 128)):
    """Deterministic synthetic parameters (PyTorch-like uniform init)."""
    k1, k2, k3, k4 = jax.random.split(key, 4)
    h1, h2 = hidden
    lim1 = 1.0 / (in_size ** 0.5)
    lim2 = 1.0 / (h1 ** 0.5)
    # stored as (in, out) == transpose of PyTorch's (out, in) weight
    w1 = jax.random.uniform(k1, (in_size, h1), jnp.float32, -lim1, lim1)
    b1 = jax.random.uniform(k2, (1, h1), jnp.float32, -lim1, lim1)
    gamma = jnp.ones((1, h1), jnp.float32)      # BatchNorm1d default weight
    beta = jnp.zeros((1, h1), jnp.float32)      # BatchNorm1d default bias
    w2 = jax.random.uniform(k3, (h1, h2), jnp.float32, -lim2, lim2)
    b2 = jax.random.uniform(k4, (1, h2), jnp.float32, -lim2, lim2)
    return w1, b1, gamma, beta, w2, b2


def reference_matched(x, w1, b1, gamma, beta, w2, b2):
    """Same math as the kernel (bf16 MXU operands, f32 stats, centered var)."""
    del b1  # cancelled by batch-mean subtraction
    h = jnp.dot(x.astype(jnp.bfloat16), w1.astype(jnp.bfloat16),
                preferred_element_type=jnp.float32)
    mean = jnp.mean(h, axis=0, keepdims=True)
    c = h - mean
    var = jnp.mean(c * c, axis=0, keepdims=True)
    h = jnp.maximum(c * (gamma * jax.lax.rsqrt(var + _EPS)) + beta, 0.0)
    out = jnp.dot(h.astype(jnp.bfloat16), w2.astype(jnp.bfloat16),
                  preferred_element_type=jnp.float32)
    return out + b2


def reference_f32(x, w1, b1, gamma, beta, w2, b2):
    """Straight f32 translation of the PyTorch module (training-mode BN)."""
    h = x @ w1 + b1
    mean = jnp.mean(h, axis=0, keepdims=True)
    var = jnp.mean((h - mean) ** 2, axis=0, keepdims=True)
    h = (h - mean) / jnp.sqrt(var + _EPS) * gamma + beta
    h = jnp.maximum(h, 0.0)
    return h @ w2 + b2


if __name__ == "__main__":
    B, IN_SIZE = 8, 32
    HIDDEN = (256, 128)

    key = jax.random.PRNGKey(0)
    kx, kp = jax.random.split(key)
    x = jax.random.normal(kx, (B, IN_SIZE), jnp.float32)
    params = init_params(kp, IN_SIZE, HIDDEN)

    # Path A: small batch -> fused single-block kernel.
    out = jax.block_until_ready(projection_forward(x, *params))
    assert out.shape == (B, HIDDEN[1])
    assert jnp.allclose(out, reference_matched(x, *params),
                        atol=2e-2, rtol=2e-2), "fused path mismatch (matched)"
    assert jnp.allclose(out, reference_f32(x, *params),
                        atol=5e-2, rtol=5e-2), "fused path mismatch (f32)"

    # Path B: tiled two-pass path (forced; small tiles; ragged last tile).
    B2 = 200
    x2 = jax.random.normal(jax.random.PRNGKey(1), (B2, IN_SIZE), jnp.float32)
    out2 = jax.block_until_ready(
        projection_forward(x2, *params, tile_b=64, force_tiled=True))
    assert out2.shape == (B2, HIDDEN[1])
    assert jnp.allclose(out2, reference_matched(x2, *params),
                        atol=2e-2, rtol=2e-2), "tiled path mismatch (matched)"
    assert jnp.allclose(out2, reference_f32(x2, *params),
                        atol=5e-2, rtol=5e-2), "tiled path mismatch (f32)"

    print("KERNEL_OK")
</pallas_src>

<mosaic_0001>
module attributes {stable_mosaic.version = 11 : i64} {
  func.func @_fused_kernel(%arg0: memref<8x32xf32, #tpu.memory_space<vmem>>, %arg1: memref<1x256xf32, #tpu.memory_space<vmem>>, %arg2: memref<1x256xf32, #tpu.memory_space<vmem>>, %arg3: memref<32x256xf32, #tpu.memory_space<vmem>>, %arg4: memref<256x128xf32, #tpu.memory_space<vmem>>, %arg5: memref<1x128xf32, #tpu.memory_space<vmem>>, %arg6: memref<8x128xf32, #tpu.memory_space<vmem>>) attributes {dimension_semantics = [], scalar_prefetch = 0 : i64, scratch_operands = 0 : i64, tpu.core_type = #tpu.core_type<tc>} {
    %c0 = arith.constant 0 : index
    %c0_0 = arith.constant 0 : index
    %0 = vector.load %arg0[%c0, %c0_0] : memref<8x32xf32, #tpu.memory_space<vmem>>, vector<8x32xf32>
    %1 = arith.truncf %0 : vector<8x32xf32> to vector<8x32xbf16>
    %c0_1 = arith.constant 0 : index
    %c0_2 = arith.constant 0 : index
    %2 = vector.load %arg3[%c0_1, %c0_2] : memref<32x256xf32, #tpu.memory_space<vmem>>, vector<32x256xf32>
    %3 = arith.truncf %2 : vector<32x256xf32> to vector<32x256xbf16>
    %cst = arith.constant dense<0.000000e+00> : vector<8x256xf32>
    %4 = tpu.matmul %1, %3, %cst {dimension_numbers = #tpu.dot_dimension_numbers<[1], [0], [0], [1], [0, 0, 1, 1], [], []>} : vector<8x32xbf16>, vector<32x256xbf16>, vector<8x256xf32> -> vector<8x256xf32>
    %cst_3 = arith.constant dense<0.000000e+00> : vector<256xf32>
    %5 = vector.multi_reduction <add>, %4, %cst_3 [0] : vector<8x256xf32> to vector<256xf32>
    %6 = vector.shape_cast %5 : vector<256xf32> to vector<1x256xf32>
    %cst_4 = arith.constant 8.000000e+00 : f32
    %7 = vector.broadcast %cst_4 : f32 to vector<1x256xf32>
    %8 = arith.divf %6, %7 : vector<1x256xf32>
    %9 = vector.broadcast %8 : vector<1x256xf32> to vector<8x256xf32>
    %10 = arith.subf %4, %9 : vector<8x256xf32>
    %11 = arith.mulf %10, %10 : vector<8x256xf32>
    %cst_5 = arith.constant dense<0.000000e+00> : vector<256xf32>
    %12 = vector.multi_reduction <add>, %11, %cst_5 [0] : vector<8x256xf32> to vector<256xf32>
    %13 = vector.shape_cast %12 : vector<256xf32> to vector<1x256xf32>
    %cst_6 = arith.constant 8.000000e+00 : f32
    %14 = vector.broadcast %cst_6 : f32 to vector<1x256xf32>
    %15 = arith.divf %13, %14 : vector<1x256xf32>
    %c0_7 = arith.constant 0 : index
    %c0_8 = arith.constant 0 : index
    %16 = vector.load %arg1[%c0_7, %c0_8] : memref<1x256xf32, #tpu.memory_space<vmem>>, vector<1x256xf32>
    %cst_9 = arith.constant 9.99999974E-6 : f32
    %17 = vector.broadcast %cst_9 : f32 to vector<1x256xf32>
    %18 = arith.addf %15, %17 : vector<1x256xf32>
    %19 = math.rsqrt %18 : vector<1x256xf32>
    %20 = arith.mulf %16, %19 : vector<1x256xf32>
    %21 = vector.broadcast %20 : vector<1x256xf32> to vector<8x256xf32>
    %22 = arith.mulf %10, %21 : vector<8x256xf32>
    %c0_10 = arith.constant 0 : index
    %c0_11 = arith.constant 0 : index
    %23 = vector.load %arg2[%c0_10, %c0_11] : memref<1x256xf32, #tpu.memory_space<vmem>>, vector<1x256xf32>
    %24 = vector.broadcast %23 : vector<1x256xf32> to vector<8x256xf32>
    %25 = arith.addf %22, %24 : vector<8x256xf32>
    %cst_12 = arith.constant 0.000000e+00 : f32
    %26 = vector.broadcast %cst_12 : f32 to vector<8x256xf32>
    %27 = arith.maximumf %25, %26 : vector<8x256xf32>
    %28 = arith.truncf %27 : vector<8x256xf32> to vector<8x256xbf16>
    %c0_13 = arith.constant 0 : index
    %c0_14 = arith.constant 0 : index
    %29 = vector.load %arg4[%c0_13, %c0_14] : memref<256x128xf32, #tpu.memory_space<vmem>>, vector<256x128xf32>
    %30 = arith.truncf %29 : vector<256x128xf32> to vector<256x128xbf16>
    %cst_15 = arith.constant dense<0.000000e+00> : vector<8x128xf32>
    %31 = tpu.matmul %28, %30, %cst_15 {dimension_numbers = #tpu.dot_dimension_numbers<[1], [0], [0], [1], [0, 0, 1, 1], [], []>} : vector<8x256xbf16>, vector<256x128xbf16>, vector<8x128xf32> -> vector<8x128xf32>
    %c0_16 = arith.constant 0 : index
    %c0_17 = arith.constant 0 : index
    %32 = vector.load %arg5[%c0_16, %c0_17] : memref<1x128xf32, #tpu.memory_space<vmem>>, vector<1x128xf32>
    %33 = vector.broadcast %32 : vector<1x128xf32> to vector<8x128xf32>
    %34 = arith.addf %31, %33 : vector<8x128xf32>
    %c0_18 = arith.constant 0 : index
    %c0_19 = arith.constant 0 : index
    %35 = vector.load %arg6[%c0_18, %c0_19] : memref<8x128xf32, #tpu.memory_space<vmem>>, vector<8x128xf32>
    tpu.vector_store %arg6[%c0_18, %c0_19], %34 {strides = array<i32>} : memref<8x128xf32, #tpu.memory_space<vmem>>, vector<8x128xf32>,
    return
  }
}

</mosaic_0001>

<bundles_post_ra>
// kernel: projection_forward.1
= control target key start
LH: loop header
LB: loop body
LE: loop exit
PB: predicated region body
PF: predicated region fallthrough
CT: control target
= control target key end

     0   :  { %11 = vsyncpa [#allocation3], 0  ;;  %s513_s0 = inlined_call_operand.hbm [shape: f32[8,32], index: 0, kind: input, shape index: {}]   ;;  %s514_s1 = inlined_call_operand.vmem [shape: f32[1,256], index: 1, kind: input, shape index: {}]   ;;  %s515_s2 = inlined_call_operand.vmem [shape: f32[1,256], index: 2, kind: input, shape index: {}]   ;;  %s516_s3 = inlined_call_operand.hbm [shape: f32[32,256], index: 3, kind: input, shape index: {}]   ;;  %s517_s4 = inlined_call_operand.hbm [shape: f32[256,128], index: 4, kind: input, shape index: {}]   ;;  %s518_s5 = inlined_call_operand.vmem [shape: f32[1,128], index: 5, kind: input, shape index: {}]   ;;  %s519_s6 = inlined_call_operand.hbm [shape: f32[8,128], index: 6, kind: output, shape index: {}]  }
   0x1   :  { %12 = vsyncpa [#allocation6], 0 }
   0x2   :  { %13 = vsyncpa [#allocation4], 0  ;;  %s447_s21 = smov [#allocation5]  }
   0x3   :  { %s33_s22 = sshll.u32 %s447_s21, 4  ;;  %s34_s22 = int_to_ptr.vmem [resolvable:$true] %s33_s22 }
   0x4   :  { %s369_s23 = scalar_lea.vmem %s34_s22, 1024  ;;  %p374_p1 = scmp.lt.s32.totalorder %s34_s22, %s34_s22 }
   0x5   :  { %p370_p0 = scmp.ne.s32.totalorder %s34_s22, %s369_s23  ;;  %p375_p2 = scmp.lt.s32.totalorder %s369_s23, %s369_s23 }
   0x7   :  { %p376_p3 = por %p375_p2, %p374_p1 }
   0x9   :  { %p377_p4 = pnand %p376_p3, %p370_p0 }
   0xb   :  { %380 = shalt.err (!%p377_p4)
}
   0xc   :  { %s448_s24 = smov 256   ;;  %s449_s25 = smov 16  }
   0xd   :  { %39 = dma.hbm_to_vmem [thread:$0]  %s516_s3, 1024, %s34_s22, [#allocation6], %s448_s24, %s448_s24, %s449_s25  }
   0xe   :  { %s450_s28 = smov [#allocation2]   ;;  %s451_s30 = smov [#allocation7]  }
   0xf   :  { %s20_s29 = sshll.u32 %s450_s28, 4  ;;  %s45_s7 = sshll.u32 %s451_s30, 4  ;;  %s21_s29 = int_to_ptr.vmem [resolvable:$true] %s20_s29  ;;  %s46_s7 = int_to_ptr.vmem [resolvable:$true] %s45_s7 }
  0x10   :  { %s389_s8 = scalar_lea.vmem %s21_s29, 128  ;;  %p394_p6 = scmp.lt.s32.totalorder %s21_s29, %s21_s29 }
  0x11   :  { %p390_p5 = scmp.ne.s32.totalorder %s21_s29, %s389_s8  ;;  %p395_p7 = scmp.lt.s32.totalorder %s389_s8, %s389_s8 }
  0x13   :  { %p396_p8 = por %p395_p7, %p394_p6 }
  0x15   :  { %p397_p9 = pnand %p396_p8, %p390_p5 }
  0x17   :  { %400 = shalt.err (!%p397_p9)
}
  0x18   :  { %23 = dma.hbm_to_vmem [thread:$0]  %s513_s0, 128, %s21_s29, [#allocation3]  }
  0x19   :  { %s409_s11 = scalar_lea.vmem %s46_s7, 4096  ;;  %p414_p11 = scmp.lt.s32.totalorder %s46_s7, %s46_s7 }
  0x1a   :  { %p410_p10 = scmp.ne.s32.totalorder %s46_s7, %s409_s11  ;;  %p415_p12 = scmp.lt.s32.totalorder %s409_s11, %s409_s11 }
  0x1c   :  { %p416_p13 = por %p415_p12, %p414_p11 }
  0x1e   :  { %p417_p0 = pnand %p416_p13, %p410_p10 }
  0x20   :  { %420 = shalt.err (!%p417_p0)
}
  0x21   :  { %s452_s3 = smov 128   ;;  %s453_s12 = smov 8  }
  0x22   :  { %51 = dma.hbm_to_vmem [thread:$0]  %s517_s4, 4096, %s46_s7, [#allocation6], %s452_s3, %s452_s3, %s453_s12  }
  0x23   :  { %441 = dma.done.wait [#allocation3], 128  }
  0x24   :  { %442 = vsyncadd [#allocation3], 4294967168 }
  0x25   :  { %443 = dma.done.wait [#allocation6], 5120  }
  0x26   :  { %444 = vsyncadd [#allocation6], 4294962176  ;;  %v454_v0 = vmov 0   ;;  %v71_v1 = vld [vmem:[#allocation5 + $0x28] sm:$0xff]  ;;  %v73_v2 = vld [vmem:[#allocation5 + $0x38] sm:$0xff]  ;;  %vm78_vm0 = vcmask 261120  }
  0x27   :  { %114 = vmatprep.mubr.bf16.mxu0 %v454_v0  ;;  %v70_v3 = vld [vmem:[#allocation5 + $0x20] sm:$0xff]  ;;  %v77_v4 = vpack.c.bf16 %v73_v2, %v71_v1  ;;  %v72_v5 = vld [vmem:[#allocation5 + $0x30] sm:$0xff]  ;;  %v67_v6 = vld [vmem:[#allocation5 + $0x8] sm:$0xff] }
  0x28   :  { %v69_v7 = vld [vmem:[#allocation5 + $0x18] sm:$0xff]  ;;  %v76_v8 = vpack.c.bf16 %v72_v5, %v70_v3  ;;  %v66_v10 = vld [vmem:[#allocation5] sm:$0xff]  ;;  %v68_v11 = vld [vmem:[#allocation5 + $0x10] sm:$0xff] }
  0x29   :  { %v75_v9 = vpack.c.bf16 %v69_v7, %v67_v6  ;;  %94 = vmatprep.subr.bf16.mxu0 %v77_v4  ;;  %v74_v12 = vpack.c.bf16 %v68_v11, %v66_v10  ;;  %v64_v13 = vld [vmem:[#allocation2] sm:$0xff]  ;;  %v241_v15 = vld [vmem:[#allocation7 + $0xf0] sm:$0xff]  ;;  %v239_v21 = vld [vmem:[#allocation7 + $0xe0] sm:$0xff] }
  0x2a   :  { %95 = vmatpush1.bf16.msra.mxu0 %v76_v8  ;;  %v65_v14 = vpack.c.bf16 %v64_v13, %v64_v13  ;;  %v242_v16 = vld [vmem:[#allocation7 + $0xf8] sm:$0xff]  ;;  %v225_v18 = vld [vmem:[#allocation7 + $0x70] sm:$0xff]  ;;  %v240_v22 = vld [vmem:[#allocation7 + $0xe8] sm:$0xff] }
  0x2b   :  { %96 = vmatprep.subr.bf16.mxu0 %v75_v9  ;;  %v258_v17 = vpack.c.bf16 %v242_v16, %v241_v15  ;;  %v226_v19 = vld [vmem:[#allocation7 + $0x78] sm:$0xff]  ;;  %v223_v23 = vld [vmem:[#allocation7 + $0x60] sm:$0xff]  ;;  %v257_v24 = vpack.c.bf16 %v240_v22, %v239_v21  ;;  %v224_v25 = vld [vmem:[#allocation7 + $0x68] sm:$0xff] }
  0x2c   :  { %v250_v20 = vpack.c.bf16 %v226_v19, %v225_v18  ;;  %v237_v26 = vld [vmem:[#allocation7 + $0xd0] sm:$0xff]  ;;  %v238_v27 = vld [vmem:[#allocation7 + $0xd8] sm:$0xff]  ;;  %v249_v28 = vpack.c.bf16 %v224_v25, %v223_v23  ;;  %v235_v32 = vld [vmem:[#allocation7 + $0xc0] sm:$0xff] }
  0x2d   :  { %325 = vmatprep.subr.bf16.mxu1 %v258_v17  ;;  %v256_v29 = vpack.c.bf16 %v238_v27, %v237_v26  ;;  %v221_v30 = vld [vmem:[#allocation7 + $0x50] sm:$0xff]  ;;  %v222_v31 = vld [vmem:[#allocation7 + $0x58] sm:$0xff]  ;;  %v236_v33 = vld [vmem:[#allocation7 + $0xc8] sm:$0xff] }
  0x2e   :  { %97 = vmatpush1.bf16.msra.mxu0 %v74_v12  ;;  %326 = vmatpush3.bf16.msra.mxu1 %v250_v20  ;;  %v248_v34 = vpack.c.bf16 %v222_v31, %v221_v30  ;;  %v255_v35 = vpack.c.bf16 %v236_v33, %v235_v32  ;;  %v219_v36 = vld [vmem:[#allocation7 + $0x40] sm:$0xff]  ;;  %v220_v37 = vld [vmem:[#allocation7 + $0x48] sm:$0xff]  ;;  %v233_v38 = vld [vmem:[#allocation7 + $0xb0] sm:$0xff] }
  0x2f   :  { %327 = vmatprep.subr.bf16.mxu1 %v257_v24  ;;  %v234_v39 = vld [vmem:[#allocation7 + $0xb8] sm:$0xff]  ;;  %v247_v40 = vpack.c.bf16 %v220_v37, %v219_v36  ;;  %v217_v42 = vld [vmem:[#allocation7 + $0x30] sm:$0xff]  ;;  %v231_v44 = vld [vmem:[#allocation7 + $0xa0] sm:$0xff]  ;;  %v455_v37 = vmov 1966171168  }
  0x30   :  { %v254_v41 = vpack.c.bf16 %v234_v39, %v233_v38  ;;  %v218_v43 = vld [vmem:[#allocation7 + $0x38] sm:$0xff]  ;;  %v232_v45 = vld [vmem:[#allocation7 + $0xa8] sm:$0xff]  ;;  %v215_v48 = vld [vmem:[#allocation7 + $0x20] sm:$0xff]  ;;  %v165_v38 = vunpack.c.l.s4 %v455_v37  ;;  %v167_v39 = vlaneseq }
  0x31   :  { %323 = vmatmul.mubr.msk.bf16.vlgmr.msra.gmra.mxu0 %vm78_vm0, %v65_v14  ;;  %v246_v46 = vpack.c.bf16 %v218_v43, %v217_v42  ;;  %v253_v47 = vpack.c.bf16 %v232_v45, %v231_v44  ;;  %v216_v49 = vld [vmem:[#allocation7 + $0x28] sm:$0xff]  ;;  %v229_v50 = vld [vmem:[#allocation7 + $0x90] sm:$0xff]  ;;  %v230_v51 = vld [vmem:[#allocation7 + $0x98] sm:$0xff] }
  0x32   :  { %328 = vmatpush3.bf16.msra.mxu1 %v249_v28  ;;  %v245_v52 = vpack.c.bf16 %v216_v49, %v215_v48  ;;  %v252_v53 = vpack.c.bf16 %v230_v51, %v229_v50  ;;  %v213_v54 = vld [vmem:[#allocation7 + $0x10] sm:$0xff]  ;;  %v214_v55 = vld [vmem:[#allocation7 + $0x18] sm:$0xff]  ;;  %v227_v56 = vld [vmem:[#allocation7 + $0x80] sm:$0xff] }
  0x33   :  { %329 = vmatprep.subr.bf16.mxu1 %v256_v29  ;;  %v228_v57 = vld [vmem:[#allocation7 + $0x88] sm:$0xff]  ;;  %v244_v58 = vpack.c.bf16 %v214_v55, %v213_v54  ;;  %v211_v60 = vld [vmem:[#allocation7] sm:$0xff]  ;;  %v193_v51 = vld [vmem:[%s515_s2] sm:$0x3]  ;;  %s456_s2 = smov [#allocation8]  }
  0x34   :  { %v251_v59 = vpack.c.bf16 %v228_v57, %v227_v56  ;;  %v212_v61 = vld [vmem:[#allocation7 + $0x8] sm:$0xff]  ;;  %s313_s18 = sshll.u32 %s456_s2, 4  ;;  %s314_s18 = int_to_ptr.vmem [resolvable:$true] %s313_s18 }
  0x35   :  { %v243_v62 = vpack.c.bf16 %v212_v61, %v211_v60  ;;  %s421_s19 = scalar_lea.vmem %s314_s18, 128  ;;  %p426_p2 = scmp.lt.s32.totalorder %s314_s18, %s314_s18 }
  0x36   :  { %330 = vmatpush3.bf16.msra.mxu1 %v248_v34  ;;  %p422_p1 = scmp.ne.s32.totalorder %s314_s18, %s421_s19  ;;  %p427_p3 = scmp.lt.s32.totalorder %s421_s19, %s421_s19 }
  0x37   :  { %331 = vmatprep.subr.bf16.mxu1 %v255_v35 }
  0x38   :  { %p428_p4 = por %p427_p3, %p426_p2 }
  0x3a   :  { %332 = vmatpush3.bf16.msra.mxu1 %v247_v40  ;;  %v166_v40 = vunpack.c.0.s8 %v165_v38  ;;  %p429_p5 = pnand %p428_p4, %p422_p1 }
  0x3b   :  { %333 = vmatprep.subr.bf16.mxu1 %v254_v41  ;;  %v168_v41 = vshrl.u32 %v167_v39, 7 }
  0x3d   :  { %v169_v43 = vsub.s32 %v166_v40, %v168_v41  ;;  %v183_v49 = vsub.s32 0, %v168_v41  ;;  %v187_v50 = vsub.s32 1, %v168_v41 }
  0x3e   :  { %334 = vmatpush3.bf16.msra.mxu1 %v246_v46 }
  0x3f   :  { %335 = vmatprep.subr.bf16.mxu1 %v253_v47  ;;  %v156_v47 = vld [vmem:[%s514_s1] sm:$0x3]  ;;  %v198_v54 = vrot.slane %v193_v51, %v183_v49  ;;  %v202_v55 = vrot.slane %v193_v51, %v187_v50 }
  0x42   :  { %336 = vmatpush3.bf16.msra.mxu1 %v245_v52 }
  0x43   :  { %337 = vmatprep.subr.bf16.mxu1 %v252_v53 }
  0x46   :  { %338 = vmatpush3.bf16.msra.mxu1 %v244_v58 }
  0x47   :  { %339 = vmatprep.subr.bf16.mxu1 %v251_v59 }
  0x4a   :  { %340 = vmatpush3.bf16.msra.mxu1 %v243_v62 }
  0xf1   :  { %v116_v63 = vpop.f32.mrf.mxu0 }
  0xf2   :  { %v123_v0 = vrot.slane %v116_v63, 4 }
  0xf3   :  { %v118_v1 = vpop.f32.mrf.mxu0 }
  0xf4   :  { %v124_v2 = vadd.f32 %v123_v0, %v116_v63  ;;  %v129_v3 = vrot.slane %v118_v1, 4 }
  0xf5   :  { %v120_v4 = vpop.f32.mrf.mxu0 }
  0xf6   :  { %v125_v5 = vrot.slane %v124_v2, 2  ;;  %v130_v6 = vadd.f32 %v129_v3, %v118_v1 }
  0xf7   :  { %v121_v7 = vpop.f32.mrf.mxu0 }
  0xf8   :  { %v126_v8 = vadd.f32 %v125_v5, %v124_v2  ;;  %v131_v9 = vrot.slane %v130_v6, 2  ;;  %v324_v2 = vld [vmem:[%s518_s5] ss:$0 sm:$0xff] }
  0xfa   :  { %v127_v10 = vrot.slane %v126_v8, 1  ;;  %v132_v11 = vadd.f32 %v131_v9, %v130_v6 }
  0xfc   :  { %v128_v12 = vadd.f32 %v127_v10, %v126_v8  ;;  %v133_v13 = vrot.slane %v132_v11, 1 }
  0xfe   :  { %v136_v14 = vmul.f32 0.125, %v128_v12  ;;  %v134_v15 = vadd.f32 %v133_v13, %v132_v11 }
 0x100   :  { %v138_v16 = vsub.f32 %v116_v63, %v136_v14  ;;  %v137_v17 = vmul.f32 0.125, %v134_v15 }
 0x102   :  { %v140_v18 = vmul.f32 %v138_v16, %v138_v16  ;;  %v139_v19 = vsub.f32 %v118_v1, %v137_v17 }
 0x104   :  { %v142_v20 = vrot.slane %v140_v18, 4  ;;  %v141_v21 = vmul.f32 %v139_v19, %v139_v19 }
 0x106   :  { %v143_v22 = vadd.f32 %v142_v20, %v140_v18  ;;  %v148_v23 = vrot.slane %v141_v21, 4 }
 0x108   :  { %v144_v24 = vrot.slane %v143_v22, 2  ;;  %v149_v25 = vadd.f32 %v148_v23, %v141_v21 }
 0x10a   :  { %v145_v26 = vadd.f32 %v144_v24, %v143_v22  ;;  %v150_v27 = vrot.slane %v149_v25, 2 }
 0x10c   :  { %v146_v28 = vrot.slane %v145_v26, 1  ;;  %v151_v29 = vadd.f32 %v150_v27, %v149_v25 }
 0x10e   :  { %v147_v30 = vadd.f32 %v146_v28, %v145_v26  ;;  %v152_v31 = vrot.slane %v151_v29, 1 }
 0x110   :  { %v154_v32 = vmul.f32 0.125, %v147_v30  ;;  %v153_v33 = vadd.f32 %v152_v31, %v151_v29 }
 0x112   :  { %v157_v34 = vadd.f32 1e-05, %v154_v32  ;;  %v155_v35 = vmul.f32 0.125, %v153_v33 }
 0x114   :  { %v158_v36 = vadd.f32 1e-05, %v155_v35  ;;  %357 = vrsqrt.f32 %v157_v34 }
 0x116   :  { %359 = vrsqrt.f32 %v158_v36 }
 0x121   :  { %v358_v42 = vpop.eup %357 }
 0x123   :  { %v360_v44 = vpop.eup %359 }
 0x124   :  { %v163_v45 = vcombine.low %v358_v42, %v360_v44 }
 0x126   :  { %v170_v46 = vrot.slane %v163_v45, %v169_v43 }
 0x128   :  { %v177_v48 = vrot.slane %v170_v46, %v169_v43 }
 0x12a   :  { %v179_v52 = vmul.f32 %v177_v48, %v156_v47 }
 0x12c   :  { %v188_v53 = vrot.slane %v179_v52, %v187_v50  ;;  %v184_v56 = vrot.slane %v179_v52, %v183_v49 }
 0x12e   :  { %v192_v57 = vmul.f32 %v188_v53, %v139_v19  ;;  %v191_v58 = vmul.f32 %v184_v56, %v138_v16 }
 0x130   :  { %v206_v59 = vadd.f32 %v202_v55, %v192_v57  ;;  %v205_v60 = vadd.f32 %v198_v54, %v191_v58 }
 0x132   :  { %v208_v61 = vmax.f32 %v206_v59, 0.0  ;;  %v207_v62 = vmax.f32 %v205_v60, 0.0 }
 0x134   :  { %v210_v63 = vpack.c.bf16 %v208_v61, %v208_v61  ;;  %v209_v0 = vpack.c.bf16 %v207_v62, %v207_v62 }
 0x136   :  { %298 = vmatprep.mubr.bf16.mxu1 %v210_v63 }
 0x137   :  { %299 = vmatmul.mubr.bf16.vlgmr.msra.gmra.mxu1 %v209_v0 }
 0x1f7   :  { %v341_v1 = vpop.f32.mrf.mxu1 }
 0x1f9   :  { %v342_v3 = vpop.f32.mrf.mxu1 }
 0x1fa   :  { %v343_v4 = vadd.f32 %v342_v3, %v341_v1 }
 0x1fb   :  { %v344_v5 = vpop.f32.mrf.mxu1 }
 0x1fc   :  { %v301_v6 = vadd.f32 %v343_v4, %v324_v2 }
 0x1fd   :  { %v345_v7 = vpop.f32.mrf.mxu1 }
 0x1fe   :  { %306 = vst [vmem:[#allocation8] sm:$0xff] %v301_v6 }
 0x1ff   :  { %432 = shalt.err (!%p429_p5)
}
 0x200   :  { %316 = dma.vmem_to_hbm [thread:$0]  %s314_s18, 128, %s519_s6, [#allocation4]  }
 0x201   :  { %445 = dma.done.wait [#allocation4], 128  }
 0x202   :  { %446 = vsyncadd [#allocation4], 4294967168 }
 0x203   :  { %320 = vsyncpa [#allocation3], 1 }
 0x204   :  { %321 = vsyncpa [#allocation6], 1 }
 0x205   :  { %322 = vsyncpa [#allocation4], 1 }

</bundles_post_ra>
